<compile_context>
chip_gen: v7x
topology: tpu7x:2x2x1
jax: 0.10.0
libtpu: 0.0.40
codegen_flags: <defaults>
</compile_context>

<pallas_src>
import functools
import math

import jax
import jax.numpy as jnp
from jax import lax
from jax.experimental import pallas as pl
from jax.experimental.pallas import tpu as pltpu

_INV_SQRT2 = 1.0 / math.sqrt(2.0)


def _round_up(x: int, m: int) -> int:
    return ((x + m - 1) // m) * m


def _vmem_capacity_bytes() -> int:
    """Trace-time VMEM capacity query; conservative fallback if unavailable."""
    try:
        info = pltpu.get_tpu_info()
        cap = int(getattr(info, "vmem_capacity_bytes", 0) or 0)
        if cap > 0:
            return cap
    except Exception:
        pass
    return 64 * 2**20  # conservative (v7x per-TensorCore VMEM)


def _gelu_exact(h):
    # erf-based GELU, matches torch.nn.GELU() default
    return 0.5 * h * (1.0 + lax.erf(h * _INV_SQRT2))


# --------------------------------- kernels ---------------------------------

def _ffn_resident_kernel(x_ref, w1_ref, b1_ref, w2_ref, b2_ref, o_ref, *, mxu_dtype):
    # Full W1/W2 resident in VMEM (constant index_map); one fused step per row tile.
    x, w1, w2 = x_ref[...], w1_ref[...], w2_ref[...]
    if mxu_dtype is not None:
        x, w1, w2 = x.astype(mxu_dtype), w1.astype(mxu_dtype), w2.astype(mxu_dtype)
    h = jnp.dot(x, w1, preferred_element_type=jnp.float32) + b1_ref[...]
    h = _gelu_exact(h)
    y = jnp.dot(h.astype(w2.dtype), w2, preferred_element_type=jnp.float32)
    o_ref[...] = (y + b2_ref[...]).astype(o_ref.dtype)


def _ffn_tiled_f32out_kernel(x_ref, w1_ref, b1_ref, w2_ref, b2_ref, o_ref, *, mxu_dtype):
    # Hidden dim streamed as the trailing "arbitrary" grid axis; f32 output block is
    # VMEM-resident across k (constant block index), so accumulate directly into it.
    k = pl.program_id(1)

    @pl.when(k == 0)
    def _():
        o_ref[...] = jnp.zeros_like(o_ref)

    x, w1, w2 = x_ref[...], w1_ref[...], w2_ref[...]
    if mxu_dtype is not None:
        x, w1, w2 = x.astype(mxu_dtype), w1.astype(mxu_dtype), w2.astype(mxu_dtype)
    h = jnp.dot(x, w1, preferred_element_type=jnp.float32) + b1_ref[...]
    h = _gelu_exact(h)
    o_ref[...] += jnp.dot(h.astype(w2.dtype), w2, preferred_element_type=jnp.float32)

    @pl.when(k == pl.num_programs(1) - 1)
    def _():
        o_ref[...] = o_ref[...] + b2_ref[...]


def _ffn_tiled_acc_kernel(x_ref, w1_ref, b1_ref, w2_ref, b2_ref, o_ref, acc_ref, *, mxu_dtype):
    # Same as above but with a separate f32 scratch accumulator (non-f32 outputs).
    k = pl.program_id(1)

    @pl.when(k == 0)
    def _():
        acc_ref[...] = jnp.zeros_like(acc_ref)

    x, w1, w2 = x_ref[...], w1_ref[...], w2_ref[...]
    if mxu_dtype is not None:
        x, w1, w2 = x.astype(mxu_dtype), w1.astype(mxu_dtype), w2.astype(mxu_dtype)
    h = jnp.dot(x, w1, preferred_element_type=jnp.float32) + b1_ref[...]
    h = _gelu_exact(h)
    acc_ref[...] += jnp.dot(h.astype(w2.dtype), w2, preferred_element_type=jnp.float32)

    @pl.when(k == pl.num_programs(1) - 1)
    def _():
        o_ref[...] = (acc_ref[...] + b2_ref[...].astype(jnp.float32)).astype(o_ref.dtype)


# --------------------------------- wrapper ---------------------------------

def feed_forward_pallas(x, w1, b1, w2, b2, *, tm=None, th=None, mxu_dtype=None,
                        allow_weight_resident=True):
    """y = gelu(x @ W1 + b1) @ W2 + b2   (Dropout(p=0) is identity).

    x : [..., d_model]
    w1: [d_model, hidden]  b1: [hidden]   (weights stored [in, out], i.e. torch weight.T)
    w2: [hidden, d_model]  b2: [d_model]
    tm/th: optional tile overrides (auto-picked from TPU generation otherwise).
    mxu_dtype: e.g. jnp.bfloat16 to cast matmul operands in-kernel (f32 accumulation).
    """
    orig_shape = x.shape
    d_model = int(orig_shape[-1])
    hidden = int(w1.shape[1])
    assert w1.shape == (d_model, hidden)
    assert b1.shape == (hidden,)
    assert w2.shape == (hidden, d_model)
    assert b2.shape == (d_model,)

    x2d = x.reshape(-1, d_model)
    M = int(x2d.shape[0])
    out_dtype = x2d.dtype
    itemsize = jnp.dtype(out_dtype).itemsize
    row_align = 8 * max(1, 4 // itemsize)          # 8 (f32) / 16 (bf16) / 32 (int8, fp8)

    vmem_cap = _vmem_capacity_bytes()
    budget = int(0.80 * vmem_cap)

    # Generation-aware defaults: v7x-class (<=64 MiB VMEM) -> smaller th, moderate tm;
    # v5e/v6e-class (128 MiB) -> larger tm to cross the compute-bound intensity threshold.
    if tm is None:
        tm = 512 if vmem_cap <= 64 * 2**20 else 768
    if th is None:
        th = 256 if vmem_cap <= 64 * 2**20 else 512

    # Row tile: never past the (padded) problem, aligned to the dtype sublane multiple.
    tm_eff = min(_round_up(tm, row_align), _round_up(M, row_align))
    # Megacore: ensure >=2 row tiles when possible so both TensorCores get work.
    if _round_up(M, tm_eff) // tm_eff < 2 and M >= 2 * row_align:
        tm_eff = _round_up(-(-M // 2), row_align)

    # ---------------- weight-resident fast path (no hidden streaming) ----------------
    w_bytes = itemsize * (2 * d_model * hidden + hidden + d_model)
    use_resident = allow_weight_resident and (w_bytes <= int(0.375 * vmem_cap))

    if use_resident:
        def resident_fp(t):
            return (4 * t * d_model * itemsize          # x & out tiles, double-buffered
                    + w_bytes                            # full weights, DMA'd once
                    + t * hidden * 4 + t * d_model * 4)  # f32 intermediates
        t = tm_eff
        while resident_fp(t) > budget and t > row_align:
            t = _round_up(max(row_align, t // 2), row_align)
        if resident_fp(t) <= budget:
            tm_eff = t
        else:
            use_resident = False

    if use_resident:
        Mp = _round_up(M, tm_eff)
        if Mp != M:
            x2d = jnp.pad(x2d, ((0, Mp - M), (0, 0)))
        b1_2d = b1.reshape(1, hidden)
        b2_2d = b2.reshape(1, d_model)
        n_row_tiles = Mp // tm_eff

        vmem_limit = int(min(0.9 * vmem_cap,
                             max(32 * 2**20, 1.25 * resident_fp(tm_eff))))
        cost = pl.CostEstimate(
            flops=4 * Mp * d_model * hidden,
            transcendentals=Mp * hidden,
            bytes_accessed=int(itemsize * (2 * Mp * d_model
                                           + 2 * d_model * hidden + hidden + d_model)),
        )

        out = pl.pallas_call(
            functools.partial(_ffn_resident_kernel, mxu_dtype=mxu_dtype),
            out_shape=jax.ShapeDtypeStruct((Mp, d_model), out_dtype),
            grid_spec=pltpu.PrefetchScalarGridSpec(
                num_scalar_prefetch=0,
                grid=(n_row_tiles,),
                in_specs=[
                    pl.BlockSpec((tm_eff, d_model), lambda i: (i, 0)),   # x row tile
                    pl.BlockSpec((d_model, hidden), lambda i: (0, 0)),   # W1 (resident)
                    pl.BlockSpec((1, hidden),       lambda i: (0, 0)),   # b1
                    pl.BlockSpec((hidden, d_model), lambda i: (0, 0)),   # W2 (resident)
                    pl.BlockSpec((1, d_model),      lambda i: (0, 0)),   # b2
                ],
                out_specs=pl.BlockSpec((tm_eff, d_model), lambda i: (i, 0)),
            ),
            compiler_params=pltpu.CompilerParams(
                dimension_semantics=("parallel",),
                vmem_limit_bytes=vmem_limit,
            ),
            cost_estimate=cost,
        )(x2d, w1, b1_2d, w2, b2_2d)

        if Mp != M:
            out = out[:M]
        return out.reshape(orig_shape)

    # ------------- tiled path: hidden streamed as "arbitrary" reduction axis -------------
    th_eff = min(_round_up(th, 128), _round_up(hidden, 128))
    f32_out = (out_dtype == jnp.float32)

    def tiled_fp(t, hk):
        return (2 * itemsize * (t * d_model + d_model * hk + hk
                                + hk * d_model + d_model + t * d_model)
                + (0 if f32_out else t * d_model * 4)    # separate f32 accumulator
                + t * hk * 4)                             # f32 intermediate activations
    while tiled_fp(tm_eff, th_eff) > budget and tm_eff > row_align:
        tm_eff = _round_up(max(row_align, tm_eff // 2), row_align)
    while tiled_fp(tm_eff, th_eff) > budget and th_eff > 128:
        th_eff = _round_up(max(128, th_eff // 2), 128)

    Mp = _round_up(M, tm_eff)
    Hp = _round_up(hidden, th_eff)
    if Mp != M:
        x2d = jnp.pad(x2d, ((0, Mp - M), (0, 0)))
    if Hp != hidden:
        # zero hidden padding is inert: gelu(0)=0 and the padded W2 rows are zero.
        w1 = jnp.pad(w1, ((0, 0), (0, Hp - hidden)))
        b1 = jnp.pad(b1, ((0, Hp - hidden),))
        w2 = jnp.pad(w2, ((0, Hp - hidden), (0, 0)))
    b1_2d = b1.reshape(1, Hp)
    b2_2d = b2.reshape(1, d_model)

    grid = (Mp // tm_eff, Hp // th_eff)
    n_row_tiles = grid[0]

    vmem_limit = int(min(0.9 * vmem_cap,
                         max(32 * 2**20, 1.25 * tiled_fp(tm_eff, th_eff))))
    cost = pl.CostEstimate(
        flops=4 * Mp * d_model * Hp,
        transcendentals=Mp * Hp,
        # weights are re-streamed once per row tile
        bytes_accessed=int(itemsize * (2 * Mp * d_model
                                       + n_row_tiles * (2 * d_model * Hp + Hp + d_model))),
    )

    kernel = _ffn_tiled_f32out_kernel if f32_out else _ffn_tiled_acc_kernel
    scratch = [] if f32_out else [pltpu.VMEM((tm_eff, d_model), jnp.float32)]

    out = pl.pallas_call(
        functools.partial(kernel, mxu_dtype=mxu_dtype),
        out_shape=jax.ShapeDtypeStruct((Mp, d_model), out_dtype),
        grid_spec=pltpu.PrefetchScalarGridSpec(
            num_scalar_prefetch=0,
            grid=grid,
            in_specs=[
                pl.BlockSpec((tm_eff, d_model), lambda i, k: (i, 0)),   # x row tile
                pl.BlockSpec((d_model, th_eff), lambda i, k: (0, k)),   # W1 hidden tile
                pl.BlockSpec((1, th_eff),       lambda i, k: (0, k)),   # b1 hidden tile
                pl.BlockSpec((th_eff, d_model), lambda i, k: (k, 0)),   # W2 hidden tile
                pl.BlockSpec((1, d_model),      lambda i, k: (0, 0)),   # b2
            ],
            out_specs=pl.BlockSpec((tm_eff, d_model), lambda i, k: (i, 0)),
            scratch_shapes=scratch,
        ),
        compiler_params=pltpu.CompilerParams(
            dimension_semantics=("parallel", "arbitrary"),
            vmem_limit_bytes=vmem_limit,
        ),
        cost_estimate=cost,
    )(x2d, w1, b1_2d, w2, b2_2d)

    if Mp != M:
        out = out[:M]
    return out.reshape(orig_shape)


# ---------------------------------- demo ----------------------------------

def _init_params(key, d_model, hidden_scale=4, dtype=jnp.float32):
    """nn.Linear-style init: U(-1/sqrt(fan_in), 1/sqrt(fan_in)); weights stored [in, out]."""
    hidden = int(d_model * hidden_scale)
    k1, k2, k3, k4 = jax.random.split(key, 4)
    bound1 = 1.0 / math.sqrt(d_model)
    bound2 = 1.0 / math.sqrt(hidden)
    w1 = jax.random.uniform(k1, (d_model, hidden), dtype, -bound1, bound1)
    b1 = jax.random.uniform(k2, (hidden,), dtype, -bound1, bound1)
    w2 = jax.random.uniform(k3, (hidden, d_model), dtype, -bound2, bound2)
    b2 = jax.random.uniform(k4, (d_model,), dtype, -bound2, bound2)
    return w1, b1, w2, b2


def _reference(x, w1, b1, w2, b2):
    h = x @ w1 + b1
    h = 0.5 * h * (1.0 + lax.erf(h * _INV_SQRT2))
    return h @ w2 + b2


if __name__ == "__main__":
    key = jax.random.PRNGKey(0)
    kx1, kx2, kx3, kp1, kp2 = jax.random.split(key, 5)
    ok = True

    # Case 1: nominal small shapes (B=2, S=8, d_model=32) -> weight-resident fast path.
    d_model = 32
    w1, b1, w2, b2 = _init_params(kp1, d_model, 4)
    x1 = jax.random.normal(kx1, (2, 8, d_model), jnp.float32)
    y1 = jax.block_until_ready(feed_forward_pallas(x1, w1, b1, w2, b2))
    ok &= (y1.shape == x1.shape)
    ok &= bool(jnp.allclose(y1, _reference(x1, w1, b1, w2, b2), atol=1e-5, rtol=1e-5))

    # Case 2: ragged row count (B=3, S=5 -> M=15) exercises the row-padding path.
    x2 = jax.random.normal(kx2, (3, 5, d_model), jnp.float32)
    y2 = jax.block_until_ready(feed_forward_pallas(x2, w1, b1, w2, b2))
    ok &= (y2.shape == x2.shape)
    ok &= bool(jnp.allclose(y2, _reference(x2, w1, b1, w2, b2), atol=1e-5, rtol=1e-5))

    # Case 3: force the hidden-streaming tiled path (multi-step k reduction, f32 output
    # accumulating directly into o_ref).
    d_model3 = 64
    w1c, b1c, w2c, b2c = _init_params(kp2, d_model3, 4)   # hidden = 256
    x3 = jax.random.normal(kx3, (2, 24, d_model3), jnp.float32)
    y3 = jax.block_until_ready(feed_forward_pallas(
        x3, w1c, b1c, w2c, b2c, tm=16, th=128, allow_weight_resident=False))
    ok &= (y3.shape == x3.shape)
    ok &= bool(jnp.allclose(y3, _reference(x3, w1c, b1c, w2c, b2c), atol=1e-5, rtol=1e-5))

    # Case 4: bf16 operands (MXU-native on v5e/v6e) through the scratch-accumulator
    # tiled path; compared with bf16-appropriate tolerances.
    to_bf16 = lambda a: a.astype(jnp.bfloat16)
    y4 = jax.block_until_ready(feed_forward_pallas(
        to_bf16(x3), to_bf16(w1c), to_bf16(b1c), to_bf16(w2c), to_bf16(b2c),
        tm=32, th=128, allow_weight_resident=False))
    ref4 = _reference(x3.astype(jnp.bfloat16).astype(jnp.float32),
                      w1c.astype(jnp.bfloat16).astype(jnp.float32),
                      b1c.astype(jnp.bfloat16).astype(jnp.float32),
                      w2c.astype(jnp.bfloat16).astype(jnp.float32),
                      b2c.astype(jnp.bfloat16).astype(jnp.float32))
    ok &= (y4.shape == x3.shape)
    ok &= bool(jnp.allclose(y4.astype(jnp.float32), ref4, atol=5e-2, rtol=5e-2))

    assert ok, "mismatch vs reference"
    print("KERNEL_OK")
</pallas_src>

<mosaic_0001>
module attributes {stable_mosaic.version = 11 : i64} {
  func.func @_ffn_resident_kernel(%arg0: i32, %arg1: memref<8x32xf32, #tpu.memory_space<vmem>>, %arg2: memref<32x128xf32, #tpu.memory_space<vmem>>, %arg3: memref<1x128xf32, #tpu.memory_space<vmem>>, %arg4: memref<128x32xf32, #tpu.memory_space<vmem>>, %arg5: memref<1x32xf32, #tpu.memory_space<vmem>>, %arg6: memref<8x32xf32, #tpu.memory_space<vmem>>) attributes {dimension_semantics = [#tpu.dimension_semantics<parallel>], iteration_bounds = array<i64: 2>, scalar_prefetch = 0 : i64, scratch_operands = 0 : i64, tpu.core_type = #tpu.core_type<tc>, window_params = [{transform_indices = @transform_0, window_bounds = array<i64: 8, 32>}, {pipeline_mode = #tpu.pipeline_mode<synchronous>, transform_indices = @transform_1, window_bounds = array<i64: 32, 128>}, {pipeline_mode = #tpu.pipeline_mode<synchronous>, transform_indices = @transform_2, window_bounds = array<i64: 1, 128>}, {pipeline_mode = #tpu.pipeline_mode<synchronous>, transform_indices = @transform_3, window_bounds = array<i64: 128, 32>}, {pipeline_mode = #tpu.pipeline_mode<synchronous>, transform_indices = @transform_4, window_bounds = array<i64: 1, 32>}, {transform_indices = @transform_5, window_bounds = array<i64: 8, 32>}]} {
    %c0 = arith.constant 0 : index
    %c0_0 = arith.constant 0 : index
    %0 = vector.load %arg1[%c0, %c0_0] : memref<8x32xf32, #tpu.memory_space<vmem>>, vector<8x32xf32>
    %c0_1 = arith.constant 0 : index
    %c0_2 = arith.constant 0 : index
    %1 = vector.load %arg2[%c0_1, %c0_2] : memref<32x128xf32, #tpu.memory_space<vmem>>, vector<32x128xf32>
    %c0_3 = arith.constant 0 : index
    %c0_4 = arith.constant 0 : index
    %2 = vector.load %arg4[%c0_3, %c0_4] : memref<128x32xf32, #tpu.memory_space<vmem>>, vector<128x32xf32>
    %cst = arith.constant dense<0.000000e+00> : vector<8x128xf32>
    %3 = tpu.matmul %0, %1, %cst {dimension_numbers = #tpu.dot_dimension_numbers<[1], [0], [0], [1], [0, 0, 1, 1], [], []>} : vector<8x32xf32>, vector<32x128xf32>, vector<8x128xf32> -> vector<8x128xf32>
    %c0_5 = arith.constant 0 : index
    %c0_6 = arith.constant 0 : index
    %4 = vector.load %arg3[%c0_5, %c0_6] : memref<1x128xf32, #tpu.memory_space<vmem>>, vector<1x128xf32>
    %5 = vector.broadcast %4 : vector<1x128xf32> to vector<8x128xf32>
    %6 = arith.addf %3, %5 : vector<8x128xf32>
    %cst_7 = arith.constant 5.000000e-01 : f32
    %7 = vector.broadcast %cst_7 : f32 to vector<8x128xf32>
    %8 = arith.mulf %7, %6 : vector<8x128xf32>
    %cst_8 = arith.constant 0.707106769 : f32
    %9 = vector.broadcast %cst_8 : f32 to vector<8x128xf32>
    %10 = arith.mulf %6, %9 : vector<8x128xf32>
    %11 = math.erf %10 : vector<8x128xf32>
    %cst_9 = arith.constant 1.000000e+00 : f32
    %12 = vector.broadcast %cst_9 : f32 to vector<8x128xf32>
    %13 = arith.addf %12, %11 : vector<8x128xf32>
    %14 = arith.mulf %8, %13 : vector<8x128xf32>
    %cst_10 = arith.constant dense<0.000000e+00> : vector<8x32xf32>
    %15 = tpu.matmul %14, %2, %cst_10 {dimension_numbers = #tpu.dot_dimension_numbers<[1], [0], [0], [1], [0, 0, 1, 1], [], []>} : vector<8x128xf32>, vector<128x32xf32>, vector<8x32xf32> -> vector<8x32xf32>
    %c0_11 = arith.constant 0 : index
    %c0_12 = arith.constant 0 : index
    %16 = vector.load %arg5[%c0_11, %c0_12] : memref<1x32xf32, #tpu.memory_space<vmem>>, vector<1x32xf32>
    %17 = vector.broadcast %16 : vector<1x32xf32> to vector<8x32xf32>
    %18 = arith.addf %15, %17 : vector<8x32xf32>
    %c0_13 = arith.constant 0 : index
    %c0_14 = arith.constant 0 : index
    %19 = vector.load %arg6[%c0_13, %c0_14] : memref<8x32xf32, #tpu.memory_space<vmem>>, vector<8x32xf32>
    tpu.vector_store %arg6[%c0_13, %c0_14], %18 {strides = array<i32>} : memref<8x32xf32, #tpu.memory_space<vmem>>, vector<8x32xf32>,
    return
  }
  func.func @transform_0(%arg0: i32) -> (i32, i32) {
    %c0_i32 = arith.constant 0 : i32
    %c0_i32_0 = arith.constant 0 : i32
    return %arg0, %c0_i32 : i32, i32
  }
  func.func @transform_1(%arg0: i32) -> (i32, i32) {
    %c0_i32 = arith.constant 0 : i32
    %c0_i32_0 = arith.constant 0 : i32
    %c0_i32_1 = arith.constant 0 : i32
    return %c0_i32, %c0_i32_0 : i32, i32
  }
  func.func @transform_2(%arg0: i32) -> (i32, i32) {
    %c0_i32 = arith.constant 0 : i32
    %c0_i32_0 = arith.constant 0 : i32
    %c0_i32_1 = arith.constant 0 : i32
    return %c0_i32, %c0_i32_0 : i32, i32
  }
  func.func @transform_3(%arg0: i32) -> (i32, i32) {
    %c0_i32 = arith.constant 0 : i32
    %c0_i32_0 = arith.constant 0 : i32
    %c0_i32_1 = arith.constant 0 : i32
    return %c0_i32, %c0_i32_0 : i32, i32
  }
  func.func @transform_4(%arg0: i32) -> (i32, i32) {
    %c0_i32 = arith.constant 0 : i32
    %c0_i32_0 = arith.constant 0 : i32
    %c0_i32_1 = arith.constant 0 : i32
    return %c0_i32, %c0_i32_0 : i32, i32
  }
  func.func @transform_5(%arg0: i32) -> (i32, i32) {
    %c0_i32 = arith.constant 0 : i32
    %c0_i32_0 = arith.constant 0 : i32
    return %arg0, %c0_i32 : i32, i32
  }
}

</mosaic_0001>

<bundles_post_ra>
// kernel: tpu_custom_call.1
= control target key start
LH: loop header
LB: loop body
LE: loop exit
PB: predicated region body
PF: predicated region fallthrough
CT: control target
= control target key end

     0   :  { %10 = vsyncpa [#allocation3], 0  ;;  %s899_s0 = inlined_call_operand.vmem [shape: f32[16,32], index: 0, kind: input, shape index: {}]   ;;  %s900_s1 = inlined_call_operand.vmem [shape: f32[32,128], index: 1, kind: input, shape index: {}]   ;;  %s901_s2 = inlined_call_operand.vmem [shape: f32[1,128], index: 2, kind: input, shape index: {}]   ;;  %s902_s3 = inlined_call_operand.vmem [shape: f32[128,32], index: 3, kind: input, shape index: {}]   ;;  %s903_s4 = inlined_call_operand.vmem [shape: f32[1,32], index: 4, kind: input, shape index: {}]   ;;  %s904_s5 = inlined_call_operand.hbm [shape: f32[16,32], index: 5, kind: output, shape index: {}]  }
   0x1   :  { %12 = vsyncpa [#allocation3 + $0x1], 0  ;;  %s731_s18 = smov 0   ;;  %s733_s19 = smov 0  }
   0x2   :  { %s735_s20 = smov 0   ;;  %s737_s21 = smov 0  }
   0x3 LB: > { %s752_s22 = sadd.s32 4294967295, %s695_s21   ;;  %s478_s23 = sadd.s32 4294967294, %s695_s21   ;;  %s695_s21 = sphi %s737_s21, %s910_s21   ;;  %s691_s20 = sphi %s735_s20, %s909_s20   ;;  %s687_s19 = sphi %s733_s19, %s908_s19   ;;  %s683_s18 = sphi %s731_s18, %s907_s18  }
   0x4   : > { %s756_s24 = sadd.s32 1, %s695_s21   ;;  %s135_s25 = sadd.s32 1, %s691_s20 }
   0x5   : > { %s132_s26 = ssub.s32 %s695_s21, %s756_s24  ;;  %p145_p0 = scmp.ne.s32.totalorder %s691_s20, %s687_s19 }
   0x6   : > { %p133_p1 = scmp.eq.s32.totalorder %s132_s26, 0  ;;  %p146_p2 = scmp.eq.s32.totalorder %s752_s22, 1 }
   0x7   : > { %p151_p3 = scmp.ne.s32.totalorder %s687_s19, %s683_s18  ;;  %p152_p4 = scmp.eq.s32.totalorder %s478_s23, 1 }
   0x8   : > { %s767_s27 = scalar_select %p133_p1, %s691_s20, %s135_s25  }
   0x9   : > { %p769_p5 = por %p146_p2, %p145_p0  ;;  %p773_p6 = por %p152_p4, %p151_p3 }
   0xa   : > { %p481_p7 = scmp.ge.s32.totalorder %s695_s21, 1  ;;  %p189_p8 = scmp.lt.s32.totalorder %s695_s21, 3 }
   0xc   : > { %p190_p9 = pnand %p481_p7, %p189_p8 }
   0xd   : > { %v221_v0 = vld [vmem:[%s900_s1] sm:$0xff] (!%p190_p9)  ;;  %v222_v1 = vld [vmem:[%s900_s1 + $0x8] sm:$0xff] (!%p190_p9)  ;;  %v223_v2 = vld [vmem:[%s900_s1 + $0x10] sm:$0xff] (!%p190_p9)  ;;  %v697_v3 = vmov (!%p190_p9), 0.0|0.0   ;;  %vm698_vm0 = vmmov (!%p190_p9), 0   ;;  %v699_v6 = vmov (!%p190_p9), 0.0  }
   0xe   : > { %193 = sbr.rel (%p190_p9) target bundleno = 485 (0x1e5), region = 40  ;;  %559 = vmatprep.subr.bf16.mxu0 (!%p190_p9), %v697_v3  ;;  %v560_v4 = vpack.c.bf16 (!%p190_p9), %v222_v1, %v221_v0  ;;  %v224_v5 = vld [vmem:[%s900_s1 + $0x18] sm:$0xff] (!%p190_p9)  ;;  %521 = vmatprep.mubr.msk.f32.mxu0 (!%p190_p9), %vm698_vm0, %v699_v6  ;;  %p216_p10 = scmp.lt.s32.totalorder (!%p190_p9), %s752_s22, 1  ;;  %v225_v7 = vld [vmem:[%s902_s3] sm:$0xff] (!%p190_p9)  ;;  %v226_v8 = vld [vmem:[%s902_s3 + $0x8] sm:$0xff] (!%p190_p9)  ;;  %vm248_vm1 = vcmask (!%p190_p9), 261120  }
   0xf   : > { %565 = vmatprep.subr.bf16.mxu1 (!%p190_p9), %v697_v3  ;;  %v566_v9 = vpack.c.bf16 (!%p190_p9), %v226_v8, %v225_v7  ;;  %v227_v10 = vld [vmem:[%s902_s3 + $0x10] sm:$0xff] (!%p190_p9)  ;;  %v228_v11 = vld [vmem:[%s902_s3 + $0x18] sm:$0xff] (!%p190_p9)  ;;  %556 = vmatprep.mubr.msk.f32.mxu1 (!%p190_p9), %vm698_vm0, %v699_v6  ;;  %v563_v12 = vpack.c.bf16 (!%p190_p9), %v224_v5, %v223_v2  ;;  %v229_v14 = vld [vmem:[%s902_s3 + $0x20] sm:$0xff] (!%p190_p9)  ;;  %s213_s26 = sand.u32 (!%p190_p9), 1, %s687_s19   ;;  %s488_s8 = sshll.u32 (!%p190_p9), %s752_s22, 7 }
  0x10   : > { %561 = vmatpush3.bf16.msra.mxu0 (!%p190_p9), %v560_v4  ;;  %v569_v13 = vpack.c.bf16 (!%p190_p9), %v228_v11, %v227_v10  ;;  %v230_v15 = vld [vmem:[%s902_s3 + $0x28] sm:$0xff] (!%p190_p9)  ;;  %v231_v18 = vld [vmem:[%s902_s3 + $0x30] sm:$0xff] (!%p190_p9)  ;;  %v232_v19 = vld [vmem:[%s902_s3 + $0x38] sm:$0xff] (!%p190_p9)  ;;  %s406_s14 = scalar_lea.sflag (!%p190_p9), [#allocation3], %s213_s26 }
  0x11   : > { %562 = vmatprep.subr.bf16.mxu0 (!%p190_p9), %v697_v3  ;;  %567 = vmatpush3.bf16.msra.mxu1 (!%p190_p9), %v566_v9  ;;  %v572_v17 = vpack.c.bf16 (!%p190_p9), %v230_v15, %v229_v14  ;;  %v575_v20 = vpack.c.bf16 (!%p190_p9), %v232_v19, %v231_v18  ;;  %v233_v21 = vld [vmem:[%s902_s3 + $0x40] sm:$0xff] (!%p190_p9)  ;;  %v234_v22 = vld [vmem:[%s902_s3 + $0x48] sm:$0xff] (!%p190_p9)  ;;  %v235_v24 = vld [vmem:[%s902_s3 + $0x50] sm:$0xff] (!%p190_p9) }
  0x12   : > { %568 = vmatprep.subr.bf16.mxu1 (!%p190_p9), %v697_v3  ;;  %v578_v23 = vpack.c.bf16 (!%p190_p9), %v234_v22, %v233_v21  ;;  %v236_v25 = vld [vmem:[%s902_s3 + $0x58] sm:$0xff] (!%p190_p9)  ;;  %v237_v27 = vld [vmem:[%s902_s3 + $0x60] sm:$0xff] (!%p190_p9)  ;;  %v238_v28 = vld [vmem:[%s902_s3 + $0x68] sm:$0xff] (!%p190_p9) }
  0x13   : > { %v581_v26 = vpack.c.bf16 (!%p190_p9), %v236_v25, %v235_v24  ;;  %v584_v29 = vpack.c.bf16 (!%p190_p9), %v238_v28, %v237_v27  ;;  %v239_v30 = vld [vmem:[%s902_s3 + $0x70] sm:$0xff] (!%p190_p9)  ;;  %v240_v31 = vld [vmem:[%s902_s3 + $0x78] sm:$0xff] (!%p190_p9)  ;;  %v484_v33 = vld [vmem:[%s901_s2] ss:$0 sm:$0xff] (!%p190_p9) }
  0x14   : > { %564 = vmatpush3.bf16.msra.mxu0 (!%p190_p9), %v563_v12  ;;  %v587_v32 = vpack.c.bf16 (!%p190_p9), %v240_v31, %v239_v30  ;;  %v486_v42 = vld [vmem:[%s903_s4] ss:$0 sm:$0xff] (!%p190_p9) }
  0x15   : > { %s217_s30 = scalar_select %p216_p10, %s752_s22, 1  ;;  %570 = vmatpush3.bf16.msra.mxu1 %v569_v13 }
  0x16   : > { %571 = vmatprep.subr.bf16.mxu1 %v697_v3  ;;  %s700_s22 = smov [#allocation2]  }
  0x17   : > { %s483_s6 = sshll.u32 %s217_s30, 3  ;;  %s482_s30 = sshll.u32 %s213_s26, 3 }
  0x18   : > { %s219_s13 = scalar_lea.vmem %s899_s0, %s483_s6  ;;  %s215_s9 = scalar_lea.vmem [#allocation2], %s482_s30 }
  0x19   : > { %v220_v16 = vld [vmem:[%s219_s13] sm:$0xff]  ;;  %573 = vmatpush3.bf16.msra.mxu1 %v572_v17  ;;  %s419_s10 = sshll.u32 %s215_s9, 4  ;;  %s856_s13 = scalar_lea.hbm %s904_s5, %s488_s8  ;;  %s858_s10 = int_to_ptr.vmem [resolvable:$true] %s419_s10 }
  0x1a   : > { %522 = vmatmul.mubr.msk.f32.vlgmr.msra.gmra.mrb[0].mxu0 %vm248_vm1, %v220_v16  ;;  %574 = vmatprep.subr.bf16.mxu1 %v697_v3  ;;  %s633_s15 = scalar_lea.vmem %s858_s10, 128  ;;  %s637_s16 = sshll.u32 %s700_s22, 4  ;;  %s638_s16 = int_to_ptr.vmem [resolvable:$false] %s637_s16 }
  0x1b   : > { %p634_p11 = scmp.ne.s32.totalorder %s858_s10, %s633_s15  ;;  %s639_s17 = scalar_lea.vmem %s638_s16, 256 }
  0x1c   : > { %p640_p0 = scmp.lt.s32.totalorder %s858_s10, %s638_s16  ;;  %p641_p1 = scmp.lt.s32.totalorder %s639_s17, %s633_s15 }
  0x1d   : > { %576 = vmatpush3.bf16.msra.mxu1 %v575_v20  ;;  %p635_p12 = pnand %p634_p11, %p769_p5 }
  0x1e   : > { %577 = vmatprep.subr.bf16.mxu1 %v697_v3  ;;  %p642_p2 = por %p641_p1, %p640_p0 }
  0x1f   : > { %p636_p13 = pneg %p635_p12 }
  0x21   : > { %579 = vmatpush3.bf16.msra.mxu1 %v578_v23  ;;  %p643_p3 = pnand %p642_p2, %p636_p13 }
  0x22   : > { %580 = vmatprep.subr.bf16.mxu1 %v697_v3 }
  0x25   : > { %582 = vmatpush3.bf16.msra.mxu1 %v581_v26 }
  0x26   : > { %583 = vmatprep.subr.bf16.mxu1 %v697_v3 }
  0x29   : > { %585 = vmatpush3.bf16.msra.mxu1 %v584_v29 }
  0x2a   : > { %586 = vmatprep.subr.bf16.mxu1 %v697_v3 }
  0x2d   : > { %588 = vmatpush3.bf16.msra.mxu1 %v587_v32 }
  0xed   : > { %v318_v34 = vpop.f32.mrb[0].mxu0 }
  0xee   : > { %v319_v35 = vadd.f32 %v484_v33, %v318_v34  ;;  %v523_v36 = vpop.f32.mrb[1].mxu0 }
  0xf0   : > { %v323_v37 = vmul.f32 0.70710677, %v319_v35  ;;  %v322_v39 = vmul.f32 0.5, %v319_v35 }
  0xf2   : > { %631 = verf.f32 %v323_v37 }
  0xfc   : > { %v632_v38 = vpop.eup %631 }
  0xfd   : > { %v325_v40 = vadd.f32 1.0, %v632_v38 }
  0xff   : > { %v326_v41 = vmul.f32 %v325_v40, %v322_v39 }
 0x101   : > { %557 = vmatmul.mubr.f32.vlgmr.msra.gmra.mrb[0].mxu1 %v326_v41 }
 0x1d4   : > { %v400_v43 = vpop.f32.mrb[0].mxu1 }
 0x1d5   : > { %v401_v44 = vadd.f32 %v486_v42, %v400_v43  ;;  %v558_v45 = vpop.f32.mrb[1].mxu1 }
 0x1d7   : > { %404 = vst.msk [vmem:[%s215_s9] sm:$0xff] %vm248_vm1, %v401_v44 }
 0x1d8   : > { %646 = shalt.err (!%p643_p3)
}
 0x1d9   : > { %s647_s23 = scalar_lea.hbm %s856_s13, 128  ;;  %s651_s30 = scalar_lea.hbm %s904_s5, 256 }
 0x1da   : > { %p648_p4 = scmp.ne.s32.totalorder %s856_s13, %s647_s23  ;;  %p652_p9 = scmp.lt.u32.totalorder %s856_s13, %s904_s5 }
 0x1db   : > { %p653_p10 = scmp.lt.u32.totalorder %s651_s30, %s647_s23  ;;  %p655_p12 = scmp.lt.u32.totalorder %s647_s23, %s856_s13 }
 0x1dc   : > { %p649_p7 = pnand %p648_p4, %p769_p5 }
 0x1dd   : > { %p654_p11 = por %p653_p10, %p652_p9 }
 0x1de   : > { %p650_p8 = pneg %p649_p7 }
 0x1df   : > { %p656_p13 = por %p655_p12, %p654_p11 }
 0x1e1   : > { %p657_p0 = pnand %p656_p13, %p650_p8 }
 0x1e3   : > { %660 = shalt.err (!%p657_p0)
}
 0x1e4   : > { %589 = dma.vmem_to_hbm [thread:$0]  (%p769_p5), %s858_s10, 128, %s856_s13, %s406_s14  }
 0x1e5 PF: > { %p595_p1 = scmp.ge.s32.totalorder %s695_s21, 2  ;;  %s431_s8 = sand.u32 1, %s683_s18  }
 0x1e6   : > { %s432_s9 = scalar_lea.sflag [#allocation3], %s431_s8 }
 0x1e7   : > { %p592_p2 = pnand %p595_p1, %p773_p6 }
 0x1e9   : > { %678 = dma.done.wait (!%p592_p2), %s432_s9, 128  }
 0x1ea   : > { %680 = vsyncadd (!%p592_p2), %s432_s9, 4294967168  ;;  %p15_p3 = scmp.ge.s32.totalorder %s756_s24, 4   ;;  %s907_s18 = smov %s687_s19 }
 0x1eb   : > { %s908_s19 = smov %s691_s20  ;;  %s909_s20 = smov %s767_s27 }
 0x1ec   : > { %s910_s21 = smov %s756_s24  ;;  %17 = sbr.rel (!%p15_p3) target bundleno = 3 (0x3), region = 75 }
 0x1f3   :  { %437 = vsyncpa [#allocation3], 1 }
 0x1f4   :  { %439 = vsyncpa [#allocation3 + $0x1], 1 }

</bundles_post_ra>
